<compile_context>
chip_gen: v7x
topology: tpu7x:2x2x1
jax: 0.10.0
libtpu: 0.0.40
codegen_flags: <defaults>
</compile_context>

<pallas_src>
import functools

import jax
import jax.numpy as jnp
from jax.experimental import pallas as pl
from jax.experimental.pallas import tpu as pltpu


_PAD_SQNORM = 1e30  # squared norm assigned to padded points -> 1/(1+d^2) ~ 1e-30


def _round_up(x, m):
    return ((x + m - 1) // m) * m


def _part_tile_kernel(xr_ref, xct_ref, sqr_ref, sqc_ref, part_ref, *, grid_r):
    """One (row-tile, column-step) block of the off-diagonal sum of 1/(1+d^2).

    xr_ref   : (TILE, T)    row slab of the embedding (bf16 or f32)
    xct_ref  : (T, TILE)    pre-transposed column slab (lane-dense RHS)
    sqr_ref  : (TILE, 1)    f32 squared norms of the row slab (1e30 on padding)
    sqc_ref  : (1, TILE)    f32 squared norms of the column slab (1e30 on padding)
    part_ref : (1, 1, TILE) f32 per-row-tile lane accumulator (resident over gj)
    """
    gj = pl.program_id(1)
    tile = xr_ref.shape[0]

    # Output block depends only on the row tile -> resident across the inner
    # (reduction) axis; initialize at the first column step.
    @pl.when(gj == 0)
    def _init():
        part_ref[...] = jnp.zeros_like(part_ref)

    # Pairwise squared distances via the Gram trick (MXU hot path, f32 accum):
    #   d2[a, b] = |x_a|^2 + |x_b|^2 - 2 <x_a, x_b>
    gram = jax.lax.dot_general(
        xr_ref[...], xct_ref[...], (((1,), (0,)), ((), ())),
        preferred_element_type=jnp.float32)                       # (TILE, TILE)
    dkl2 = jnp.maximum(sqr_ref[...] + sqc_ref[...] - 2.0 * gram, 0.0)

    # 1/(1 + d^2): approx reciprocal on the EUP + one Newton step (~f32 exact).
    y = 1.0 + dkl2
    r = pl.reciprocal(y, approx=True)
    r = r * (2.0 - y * r)

    # Column-wise partial sums into the lane-dense accumulator: vreg VPU adds
    # plus one sublane reduce; no per-step cross-lane scalar reduction.
    colsum = jnp.sum(r, axis=0, keepdims=True)                    # (1, TILE)

    # Symmetry weights: the diagonal tile (gj == 0) and, for even grid_r, the
    # self-mirrored step (2*gj == grid_r) are each visited from both sides ->
    # weight 1; every other unordered block pair is visited once -> weight 2.
    w = jnp.where(jnp.logical_or(gj == 0, 2 * gj == grid_r), 1.0, 2.0)
    part_ref[...] += (w * colsum)[None]

    # Remove the diagonal contribution — only on the diagonal tile, so interior
    # tiles pay no iota/compare/select work at all.
    @pl.when(gj == 0)
    def _drop_diag():
        rr = jax.lax.broadcasted_iota(jnp.int32, (tile, tile), 0)
        cc = jax.lax.broadcasted_iota(jnp.int32, (tile, tile), 1)
        diag_colsum = jnp.sum(jnp.where(rr == cc, r, 0.0), axis=0, keepdims=True)
        part_ref[...] -= diag_colsum[None]


def topicsne_forward(weight, pij, i, j, *, tile=512, gram_dtype=jnp.bfloat16):
    """weight: (N, T), pij: (B,), i/j: (B,) int -> scalar f32 KL loss."""
    if tile <= 0 or tile % 128 != 0:
        raise ValueError("tile must be a positive multiple of 128")
    n, t = weight.shape
    w32 = weight.astype(jnp.float32)

    n_pad = _round_up(n, tile)
    grid_r = n_pad // tile
    n_col_steps = grid_r // 2 + 1   # diagonal step + unique off-diagonal pairs

    # Zero-pad extra points; give them a huge squared norm so their 1/(1+d^2)
    # terms are ~1e-30 and vanish from `part` without any per-step masking.
    w_pad = jnp.pad(w32, ((0, n_pad - n), (0, 0)))
    sq = jnp.sum(w32 * w32, axis=1)
    sq = jnp.pad(sq, (0, n_pad - n), constant_values=_PAD_SQNORM)

    w_row = w_pad.astype(gram_dtype)                    # (N_pad, T) row slabs
    w_colt = jnp.transpose(w_pad).astype(gram_dtype)    # (T, N_pad) lane-dense RHS
    sq_row = sq.reshape(n_pad, 1)
    sq_col = sq.reshape(1, n_pad)

    part_vec = pl.pallas_call(
        functools.partial(_part_tile_kernel, grid_r=grid_r),
        grid=(grid_r, n_col_steps),
        in_specs=[
            pl.BlockSpec((tile, t), lambda gi, gj: (gi, 0)),
            pl.BlockSpec((t, tile), lambda gi, gj: (0, (gi + gj) % grid_r)),
            pl.BlockSpec((tile, 1), lambda gi, gj: (gi, 0)),
            pl.BlockSpec((1, tile), lambda gi, gj: (0, (gi + gj) % grid_r)),
        ],
        out_specs=pl.BlockSpec((1, 1, tile), lambda gi, gj: (gi, 0, 0)),
        out_shape=jax.ShapeDtypeStruct((grid_r, 1, tile), jnp.float32),
        compiler_params=pltpu.CompilerParams(
            dimension_semantics=("parallel", "arbitrary"),
            vmem_limit_bytes=32 * 1024 * 1024),
        # TODO(synk): on v5e, set pipeline_mode=pl.Buffered(3) on the column
        # slabs if their DMA is still exposed at large tiles.
    )(w_row, w_colt, sq_row, sq_col)

    part = jnp.sum(part_vec)          # off-diagonal sum of 1/(1+d^2)

    # Batch term: O(B*T) gather + reduce in plain JAX (hoisted out of kernel).
    xi = jnp.take(w32, i.astype(jnp.int32), axis=0)
    xj = jnp.take(w32, j.astype(jnp.int32), axis=0)
    d2_ij = jnp.sum((xi - xj) ** 2, axis=1)
    denom = jnp.float32(t) + d2_ij    # == sum_k(1 + (xi_k - xj_k)^2)

    pij = pij.astype(jnp.float32)
    # Numerically stable form of pij * (log pij - log qij), qij = 1/(denom*part).
    return jnp.sum(pij * (jnp.log(pij) + jnp.log(denom) + jnp.log(part)))


def topicsne_reference(weight, pij, i, j):
    """Pure-JAX reference with the exact PyTorch formulation (for validation)."""
    x = weight
    xk = x[None, :, :]
    xl = x[:, None, :]
    dkl2 = jnp.sum((xk - xl) ** 2.0, axis=2)
    n_diag = dkl2.shape[0]
    part = jnp.sum((1.0 + dkl2) ** -1.0) - n_diag
    xi = weight[i]
    xj = weight[j]
    num = jnp.sum(1.0 + (xi - xj) ** 2.0, axis=1) ** -1.0
    qij = num / part
    return jnp.sum(pij * (jnp.log(pij) - jnp.log(qij)))


if __name__ == "__main__":
    key = jax.random.PRNGKey(0)

    # (n_points, n_topics, batch, tile):
    #   grid_r = 1 (single tile, padded) / 3 (odd symmetry + padding, T=24)
    #   / 4 (even grid: exercises the mirror column step, exact fit).
    cases = [
        (64, 16, 32, 128),
        (300, 24, 32, 128),
        (512, 16, 16, 128),
    ]

    for case_id, (n_points, n_topics, batch, tile) in enumerate(cases):
        key, k_w, k_i, k_j, k_p = jax.random.split(key, 5)

        # nn.Embedding(n_points, n_topics) default init: N(0, 1).
        logits_weight = jax.random.normal(k_w, (n_points, n_topics),
                                          dtype=jnp.float32)
        # (`topic` = nn.Linear(n_topics, n_dim) is unused in forward(); omitted.)

        i_idx = jax.random.randint(k_i, (batch,), 0, n_points, dtype=jnp.int32)
        j_idx = jax.random.randint(k_j, (batch,), 0, n_points, dtype=jnp.int32)

        # strictly positive, normalized probabilities (t-SNE-style p_ij)
        pij = jax.random.uniform(k_p, (batch,), minval=0.01, maxval=1.0)
        pij = pij / jnp.sum(pij)

        fwd = jax.jit(functools.partial(topicsne_forward, tile=tile))
        loss = fwd(logits_weight, pij, i_idx, j_idx)
        jax.block_until_ready(loss)

        loss_ref = topicsne_reference(logits_weight, pij, i_idx, j_idx)
        assert jnp.allclose(loss, loss_ref, rtol=1e-3, atol=1e-4), (
            case_id, loss, loss_ref)

    print("KERNEL_OK")
</pallas_src>

<mosaic_0001>
module attributes {stable_mosaic.version = 11 : i64} {
  func.func @_part_tile_kernel(%arg0: i32, %arg1: i32, %arg2: memref<128x16xbf16, #tpu.memory_space<vmem>>, %arg3: memref<16x128xbf16, #tpu.memory_space<vmem>>, %arg4: memref<128x1xf32, #tpu.memory_space<vmem>>, %arg5: memref<1x128xf32, #tpu.memory_space<vmem>>, %arg6: memref<1x1x128xf32, #tpu.memory_space<vmem>>) attributes {dimension_semantics = [#tpu.dimension_semantics<parallel>, #tpu.dimension_semantics<arbitrary>], iteration_bounds = array<i64: 1, 1>, scalar_prefetch = 0 : i64, scratch_operands = 0 : i64, tpu.core_type = #tpu.core_type<tc>, window_params = [{transform_indices = @transform_0, window_bounds = array<i64: 128, 16>}, {transform_indices = @transform_1, window_bounds = array<i64: 16, 128>}, {transform_indices = @transform_2, window_bounds = array<i64: 128, 1>}, {transform_indices = @transform_3, window_bounds = array<i64: 1, 128>}, {transform_indices = @transform_4, window_bounds = array<i64: 1, 1, 128>}]} {
    %c0_i32 = arith.constant 0 : i32
    %0 = arith.cmpi eq, %arg1, %c0_i32 : i32
    %1 = arith.extui %0 : i1 to i32
    %c0_i32_0 = arith.constant 0 : i32
    %2 = arith.cmpi ne, %1, %c0_i32_0 : i32
    scf.if %2 {
      %cst_24 = arith.constant 0.000000e+00 : f32
      %39 = vector.broadcast %cst_24 : f32 to vector<1x1x128xf32>
      %c0_25 = arith.constant 0 : index
      %c0_26 = arith.constant 0 : index
      %c0_27 = arith.constant 0 : index
      %40 = vector.load %arg6[%c0_25, %c0_26, %c0_27] : memref<1x1x128xf32, #tpu.memory_space<vmem>>, vector<1x1x128xf32>
      tpu.vector_store %arg6[%c0_25, %c0_26, %c0_27], %39 {strides = array<i32>} : memref<1x1x128xf32, #tpu.memory_space<vmem>>, vector<1x1x128xf32>,
    } else {
    }
    %c0 = arith.constant 0 : index
    %c0_1 = arith.constant 0 : index
    %3 = vector.load %arg2[%c0, %c0_1] : memref<128x16xbf16, #tpu.memory_space<vmem>>, vector<128x16xbf16>
    %c0_2 = arith.constant 0 : index
    %c0_3 = arith.constant 0 : index
    %4 = vector.load %arg3[%c0_2, %c0_3] : memref<16x128xbf16, #tpu.memory_space<vmem>>, vector<16x128xbf16>
    %cst = arith.constant dense<0.000000e+00> : vector<128x128xf32>
    %5 = tpu.matmul %3, %4, %cst {dimension_numbers = #tpu.dot_dimension_numbers<[1], [0], [0], [1], [0, 0, 1, 1], [], []>} : vector<128x16xbf16>, vector<16x128xbf16>, vector<128x128xf32> -> vector<128x128xf32>
    %c0_4 = arith.constant 0 : index
    %c0_5 = arith.constant 0 : index
    %6 = vector.load %arg4[%c0_4, %c0_5] : memref<128x1xf32, #tpu.memory_space<vmem>>, vector<128x1xf32>
    %c0_6 = arith.constant 0 : index
    %c0_7 = arith.constant 0 : index
    %7 = vector.load %arg5[%c0_6, %c0_7] : memref<1x128xf32, #tpu.memory_space<vmem>>, vector<1x128xf32>
    %8 = vector.broadcast %6 : vector<128x1xf32> to vector<128x128xf32>
    %9 = vector.broadcast %7 : vector<1x128xf32> to vector<128x128xf32>
    %10 = arith.addf %8, %9 : vector<128x128xf32>
    %cst_8 = arith.constant 2.000000e+00 : f32
    %11 = vector.broadcast %cst_8 : f32 to vector<128x128xf32>
    %12 = arith.mulf %11, %5 : vector<128x128xf32>
    %13 = arith.subf %10, %12 : vector<128x128xf32>
    %cst_9 = arith.constant 0.000000e+00 : f32
    %14 = vector.broadcast %cst_9 : f32 to vector<128x128xf32>
    %15 = arith.maximumf %13, %14 : vector<128x128xf32>
    %cst_10 = arith.constant 1.000000e+00 : f32
    %16 = vector.broadcast %cst_10 : f32 to vector<128x128xf32>
    %17 = arith.addf %16, %15 : vector<128x128xf32>
    %18 = tpu.reciprocal %17 {approx = true} : vector<128x128xf32> -> vector<128x128xf32>
    %19 = arith.mulf %17, %18 : vector<128x128xf32>
    %cst_11 = arith.constant 2.000000e+00 : f32
    %20 = vector.broadcast %cst_11 : f32 to vector<128x128xf32>
    %21 = arith.subf %20, %19 : vector<128x128xf32>
    %22 = arith.mulf %18, %21 : vector<128x128xf32>
    %cst_12 = arith.constant dense<0.000000e+00> : vector<128xf32>
    %23 = vector.multi_reduction <add>, %22, %cst_12 [0] : vector<128x128xf32> to vector<128xf32>
    %24 = vector.shape_cast %23 : vector<128xf32> to vector<1x128xf32>
    %c0_i32_13 = arith.constant 0 : i32
    %25 = arith.cmpi eq, %arg1, %c0_i32_13 : i32
    %c2_i32 = arith.constant 2 : i32
    %26 = arith.muli %c2_i32, %arg1 : i32
    %c1_i32 = arith.constant 1 : i32
    %27 = arith.cmpi eq, %26, %c1_i32 : i32
    %28 = arith.ori %25, %27 : i1
    %cst_14 = arith.constant 1.000000e+00 : f32
    %cst_15 = arith.constant 2.000000e+00 : f32
    %29 = arith.select %28, %cst_14, %cst_15 : f32
    %c0_16 = arith.constant 0 : index
    %c0_17 = arith.constant 0 : index
    %c0_18 = arith.constant 0 : index
    %30 = vector.load %arg6[%c0_16, %c0_17, %c0_18] : memref<1x1x128xf32, #tpu.memory_space<vmem>>, vector<1x1x128xf32>
    %31 = vector.broadcast %29 : f32 to vector<1x128xf32>
    %32 = arith.mulf %31, %24 : vector<1x128xf32>
    %33 = vector.shape_cast %32 : vector<1x128xf32> to vector<1x1x128xf32>
    %34 = arith.addf %30, %33 : vector<1x1x128xf32>
    %c0_19 = arith.constant 0 : index
    %c0_20 = arith.constant 0 : index
    %c0_21 = arith.constant 0 : index
    %35 = vector.load %arg6[%c0_19, %c0_20, %c0_21] : memref<1x1x128xf32, #tpu.memory_space<vmem>>, vector<1x1x128xf32>
    tpu.vector_store %arg6[%c0_19, %c0_20, %c0_21], %34 {strides = array<i32>} : memref<1x1x128xf32, #tpu.memory_space<vmem>>, vector<1x1x128xf32>,
    %c0_i32_22 = arith.constant 0 : i32
    %36 = arith.cmpi eq, %arg1, %c0_i32_22 : i32
    %37 = arith.extui %36 : i1 to i32
    %c0_i32_23 = arith.constant 0 : i32
    %38 = arith.cmpi ne, %37, %c0_i32_23 : i32
    scf.if %38 {
      %39 = tpu.iota {dimensions = array<i32: 0>} : vector<128x128xi32>
      %40 = tpu.iota {dimensions = array<i32: 1>} : vector<128x128xi32>
      %41 = arith.cmpi eq, %39, %40 : vector<128x128xi32>
      %cst_24 = arith.constant 0.000000e+00 : f32
      %42 = vector.broadcast %cst_24 : f32 to vector<128x128xf32>
      %43 = arith.select %41, %22, %42 : vector<128x128xi1>, vector<128x128xf32>
      %cst_25 = arith.constant dense<0.000000e+00> : vector<128xf32>
      %44 = vector.multi_reduction <add>, %43, %cst_25 [0] : vector<128x128xf32> to vector<128xf32>
      %45 = vector.shape_cast %44 : vector<128xf32> to vector<1x128xf32>
      %c0_26 = arith.constant 0 : index
      %c0_27 = arith.constant 0 : index
      %c0_28 = arith.constant 0 : index
      %46 = vector.load %arg6[%c0_26, %c0_27, %c0_28] : memref<1x1x128xf32, #tpu.memory_space<vmem>>, vector<1x1x128xf32>
      %47 = vector.shape_cast %45 : vector<1x128xf32> to vector<1x1x128xf32>
      %48 = arith.subf %46, %47 : vector<1x1x128xf32>
      %c0_29 = arith.constant 0 : index
      %c0_30 = arith.constant 0 : index
      %c0_31 = arith.constant 0 : index
      %49 = vector.load %arg6[%c0_29, %c0_30, %c0_31] : memref<1x1x128xf32, #tpu.memory_space<vmem>>, vector<1x1x128xf32>
      tpu.vector_store %arg6[%c0_29, %c0_30, %c0_31], %48 {strides = array<i32>} : memref<1x1x128xf32, #tpu.memory_space<vmem>>, vector<1x1x128xf32>,
    } else {
    }
    return
  }
  func.func @transform_0(%arg0: i32, %arg1: i32) -> (i32, i32) {
    %c0_i32 = arith.constant 0 : i32
    %c0_i32_0 = arith.constant 0 : i32
    return %arg0, %c0_i32 : i32, i32
  }
  func.func @transform_1(%arg0: i32, %arg1: i32) -> (i32, i32) {
    %0 = arith.addi %arg0, %arg1 : i32
    %c1_i32 = arith.constant 1 : i32
    %c0_i32 = arith.constant 0 : i32
    %1 = arith.cmpi eq, %c1_i32, %c0_i32 : i32
    %c1_i32_0 = arith.constant 1 : i32
    %2 = arith.select %1, %c1_i32_0, %c1_i32 : i32
    %3 = arith.remsi %0, %2 : i32
    %c0_i32_1 = arith.constant 0 : i32
    %4 = arith.cmpi ne, %3, %c0_i32_1 : i32
    %c0_i32_2 = arith.constant 0 : i32
    %5 = arith.cmpi slt, %3, %c0_i32_2 : i32
    %c0_i32_3 = arith.constant 0 : i32
    %6 = arith.cmpi slt, %2, %c0_i32_3 : i32
    %7 = arith.xori %5, %6 : i1
    %8 = arith.andi %7, %4 : i1
    %9 = arith.addi %3, %2 : i32
    %10 = arith.select %8, %9, %3 : i32
    %c0_i32_4 = arith.constant 0 : i32
    %c0_i32_5 = arith.constant 0 : i32
    return %c0_i32_4, %10 : i32, i32
  }
  func.func @transform_2(%arg0: i32, %arg1: i32) -> (i32, i32) {
    %c0_i32 = arith.constant 0 : i32
    %c0_i32_0 = arith.constant 0 : i32
    return %arg0, %c0_i32 : i32, i32
  }
  func.func @transform_3(%arg0: i32, %arg1: i32) -> (i32, i32) {
    %0 = arith.addi %arg0, %arg1 : i32
    %c1_i32 = arith.constant 1 : i32
    %c0_i32 = arith.constant 0 : i32
    %1 = arith.cmpi eq, %c1_i32, %c0_i32 : i32
    %c1_i32_0 = arith.constant 1 : i32
    %2 = arith.select %1, %c1_i32_0, %c1_i32 : i32
    %3 = arith.remsi %0, %2 : i32
    %c0_i32_1 = arith.constant 0 : i32
    %4 = arith.cmpi ne, %3, %c0_i32_1 : i32
    %c0_i32_2 = arith.constant 0 : i32
    %5 = arith.cmpi slt, %3, %c0_i32_2 : i32
    %c0_i32_3 = arith.constant 0 : i32
    %6 = arith.cmpi slt, %2, %c0_i32_3 : i32
    %7 = arith.xori %5, %6 : i1
    %8 = arith.andi %7, %4 : i1
    %9 = arith.addi %3, %2 : i32
    %10 = arith.select %8, %9, %3 : i32
    %c0_i32_4 = arith.constant 0 : i32
    %c0_i32_5 = arith.constant 0 : i32
    return %c0_i32_4, %10 : i32, i32
  }
  func.func @transform_4(%arg0: i32, %arg1: i32) -> (i32, i32, i32) {
    %c0_i32 = arith.constant 0 : i32
    %c0_i32_0 = arith.constant 0 : i32
    %c0_i32_1 = arith.constant 0 : i32
    return %arg0, %c0_i32, %c0_i32_0 : i32, i32, i32
  }
}

</mosaic_0001>

<bundles_post_ra>
// kernel: topicsne_forward.1
= control target key start
LH: loop header
LB: loop body
LE: loop exit
PB: predicated region body
PF: predicated region fallthrough
CT: control target
= control target key end

     0   :  { %v660_v1 = vmov 0   ;;  %vm87_vm0 = vcmask 130048   ;;  %v661_v26 = vmov 0.0   ;;  %v489_v38 = vlaneseq  ;;  %s918_s1 = inlined_call_operand.vmem [shape: bf16[16,128], index: 1, kind: input, shape index: {}]   ;;  %s919_s0 = inlined_call_operand.vmem [shape: bf16[128,16], index: 0, kind: input, shape index: {}]   ;;  %s920_s2 = inlined_call_operand.vmem [shape: f32[128,1], index: 2, kind: input, shape index: {}]   ;;  %s921_s4 = inlined_call_operand.vmem [shape: f32[1,1,128], index: 4, kind: output, shape index: {}]   ;;  %s922_s3 = inlined_call_operand.vmem [shape: f32[1,128], index: 3, kind: input, shape index: {}]  }
   0x1   :  { %v619_v0 = vld [vmem:[%s918_s1] sm:$0xff]   ;;  %617 = vset.pattern.permute.xlu0 %v660_v1  ;;  %618 = vset.pattern.permute.xlu1 %v660_v1  ;;  %v622_v4 = vld [vmem:[%s919_s0 + $0x8] sm:$0xff]   ;;  %v624_v6 = vld [vmem:[%s919_s0 + $0x10] sm:$0xff]   ;;  %22 = vst [vmem:[%s921_s4] sm:$0x1] %v661_v26 }
   0x2   :  { %v620_v2 = vld [vmem:[%s919_s0] sm:$0xff]   ;;  %595 = vmatprep.subr.bf16.mxu0 %v619_v0  ;;  %613 = vmatprep.subr.bf16.mxu1 %v619_v0  ;;  %v623_v5 = vld [vmem:[%s919_s0 + $0x28] sm:$0xff]   ;;  %v625_v7 = vld [vmem:[%s919_s0 + $0x30] sm:$0xff]   ;;  %v783_v49 = vshrl.u32 %v489_v38, 7 }
   0x3   :  { %v621_v3 = vld [vmem:[%s919_s0 + $0x20] sm:$0xff]   ;;  %596 = vmatpush3.bf16.msra.mxu0 %v619_v0  ;;  %614 = vmatpush3.bf16.msra.mxu1 %v619_v0  ;;  %v211_v9 = vld [vmem:[%s920_s2 + $0x10] sm:$0xff]  ;;  %v626_v10 = vld [vmem:[%s919_s0 + $0x18] sm:$0xff]  }
   0x4   :  { %597 = vmatprep.mubr.msk.bf16.mxu0 %vm87_vm0, %v620_v2  ;;  %605 = vmatprep.mubr.msk.bf16.mxu1 %vm87_vm0, %v621_v3  ;;  %v209_v8 = vld [vmem:[%s920_s2] sm:$0xff]  ;;  %v627_v11 = vld [vmem:[%s919_s0 + $0x38] sm:$0xff]   ;;  %v210_v12 = vld [vmem:[%s920_s2 + $0x8] sm:$0xff]  ;;  %v787_v62 = vadd.s32 16, %v783_v49 }
   0x5   :  { %228 = vperm.xlu0 %617, %v209_v8   ;;  %238 = vperm.xlu1 %618, %v211_v9   ;;  %v212_v13 = vld [vmem:[%s920_s2 + $0x18] sm:$0xff]  ;;  %v213_v14 = vld [vmem:[%s920_s2 + $0x20] sm:$0xff]  ;;  %v214_v15 = vld [vmem:[%s920_s2 + $0x28] sm:$0xff] }
   0x6   :  { %598 = vmatmul.mubr.msk.bf16.vlgmr.msra.gmra.mrb[0].mxu0 %vm87_vm0, %v622_v4  ;;  %606 = vmatmul.mubr.msk.bf16.vlgmr.msra.gmra.mrb[0].mxu1 %vm87_vm0, %v623_v5  ;;  %v215_v16 = vld [vmem:[%s920_s2 + $0x30] sm:$0xff]  ;;  %v216_v17 = vld [vmem:[%s920_s2 + $0x38] sm:$0xff]  ;;  %v217_v18 = vld [vmem:[%s920_s2 + $0x40] sm:$0xff] }
   0x7   :  { %601 = vmatprep.mubr.msk.bf16.mxu0 %vm87_vm0, %v624_v6  ;;  %609 = vmatprep.mubr.msk.bf16.mxu1 %vm87_vm0, %v625_v7  ;;  %v218_v19 = vld [vmem:[%s920_s2 + $0x48] sm:$0xff]  ;;  %v219_v20 = vld [vmem:[%s920_s2 + $0x50] sm:$0xff]  ;;  %v220_v21 = vld [vmem:[%s920_s2 + $0x58] sm:$0xff] }
   0x8   :  { %v221_v22 = vld [vmem:[%s920_s2 + $0x60] sm:$0xff]  ;;  %v222_v23 = vld [vmem:[%s920_s2 + $0x68] sm:$0xff]  ;;  %v223_v24 = vld [vmem:[%s920_s2 + $0x70] sm:$0xff] }
   0x9   :  { %233 = vperm.xlu0 %617, %v210_v12   ;;  %243 = vperm.xlu1 %618, %v212_v13   ;;  %v224_v25 = vld [vmem:[%s920_s2 + $0x78] sm:$0xff]  ;;  %v778_v37 = vld [vmem:[%s922_s3] ss:$0 sm:$0xff] }
   0xd   :  { %248 = vperm.xlu0 %617, %v213_v14   ;;  %253 = vperm.xlu1 %618, %v214_v15  }
   0xe   :  { %602 = vmatmul.mubr.msk.bf16.gmra.mrb[4].mxu0 %vm87_vm0, %v626_v10  ;;  %610 = vmatmul.mubr.msk.bf16.gmra.mrb[4].mxu1 %vm87_vm0, %v627_v11 }
  0x11   :  { %258 = vperm.xlu0 %617, %v215_v16   ;;  %263 = vperm.xlu1 %618, %v216_v17  }
  0x15   :  { %268 = vperm.xlu0 %617, %v217_v18   ;;  %273 = vperm.xlu1 %618, %v218_v19  }
  0x19   :  { %278 = vperm.xlu0 %617, %v219_v20   ;;  %283 = vperm.xlu1 %618, %v220_v21  }
  0x1d   :  { %288 = vperm.xlu0 %617, %v221_v22   ;;  %293 = vperm.xlu1 %618, %v222_v23  }
  0x21   :  { %298 = vperm.xlu0 %617, %v223_v24   ;;  %303 = vperm.xlu1 %618, %v224_v25  }
  0x84   :  { %v229_v27 = vpop.permute.xlu0 %228  ;;  %v239_v28 = vpop.permute.xlu1 %238 }
  0x85   :  { %v314_v39 = vadd.f32 %v778_v37, %v239_v28  ;;  %v312_v48 = vadd.f32 %v778_v37, %v229_v27 }
  0x88   :  { %v234_v29 = vpop.permute.xlu0 %233  ;;  %v244_v30 = vpop.permute.xlu1 %243 }
  0x89   :  { %v315_v44 = vadd.f32 %v778_v37, %v244_v30  ;;  %v313_v57 = vadd.f32 %v778_v37, %v234_v29 }
  0x8c   :  { %v249_v31 = vpop.permute.xlu0 %248  ;;  %v773_v32 = vpop.permute.xlu1 %253 }
  0x8d   :  { %v316_v2 = vadd.f32 %v778_v37, %v249_v31 }
  0x90   :  { %v259_v33 = vpop.permute.xlu0 %258  ;;  %v264_v34 = vpop.permute.xlu1 %263 }
  0x91   :  { %v318_v14 = vadd.f32 %v778_v37, %v259_v33  ;;  %v319_v19 = vadd.f32 %v778_v37, %v264_v34  ;;  %v808_v34 = vand.u32 127, %v489_v38 }
  0x93   :  { %vm510_vm1 = vcmp.eq.s32.totalorder %v787_v62, %v808_v34  ;;  %vm508_vm2 = vcmp.eq.s32.totalorder %v783_v49, %v808_v34 }
  0x94   :  { %v269_v35 = vpop.permute.xlu0 %268  ;;  %v274_v36 = vpop.permute.xlu1 %273 }
  0x95   :  { %v320_v3 = vadd.f32 %v778_v37, %v269_v35  ;;  %v321_v8 = vadd.f32 %v778_v37, %v274_v36 }
  0x98   :  { %v279_v40 = vpop.permute.xlu0 %278  ;;  %v284_v41 = vpop.permute.xlu1 %283 }
  0x99   :  { %v322_v20 = vadd.f32 %v778_v37, %v279_v40  ;;  %v323_v30 = vadd.f32 %v778_v37, %v284_v41  ;;  %v317_v40 = vadd.f32 %v778_v37, %v773_v32 }
  0x9c   :  { %v289_v4 = vpop.permute.xlu0 %288  ;;  %v791_v5 = vpop.permute.xlu1 %293 }
  0x9d   :  { %v324_v38 = vadd.f32 %v778_v37, %v289_v4 }
  0xd9   :  { %v599_v42 = vpop.f32.mrb[0].mxu0  ;;  %v607_v43 = vpop.f32.mrb[0].mxu1 }
  0xda   :  { %v330_v45 = vmul.f32 2.0, %v599_v42  ;;  %v146_v46 = vpop.f32.mrb[1].mxu0  ;;  %v178_v47 = vpop.f32.mrb[1].mxu1  ;;  %v338_v21 = vmul.f32 2.0, %v607_v43 }
  0xdb   :  { %v328_v50 = vmul.f32 2.0, %v146_v46  ;;  %v600_v51 = vpop.f32.mrb[2].mxu0  ;;  %v608_v52 = vpop.f32.mrb[2].mxu1  ;;  %v336_v0 = vmul.f32 2.0, %v178_v47 }
  0xdc   :  { %v346_v53 = vsub.f32 %v314_v39, %v330_v45  ;;  %v331_v54 = vmul.f32 2.0, %v600_v51  ;;  %v149_v55 = vpop.f32.mrb[3].mxu0  ;;  %v181_v56 = vpop.f32.mrb[3].mxu1  ;;  %v339_v31 = vmul.f32 2.0, %v608_v52  ;;  %v354_v43 = vsub.f32 %v322_v20, %v338_v21 }
  0xdd   :  { %v344_v58 = vsub.f32 %v312_v48, %v328_v50  ;;  %v329_v59 = vmul.f32 2.0, %v149_v55  ;;  %v337_v11 = vmul.f32 2.0, %v181_v56  ;;  %v352_v22 = vsub.f32 %v320_v3, %v336_v0  ;;  %v299_v42 = vpop.permute.xlu0 %298 }
  0xde   :  { %v362_v60 = vmax.f32 %v346_v53, 0.0  ;;  %v347_v61 = vsub.f32 %v315_v44, %v331_v54  ;;  %v355_v48 = vsub.f32 %v323_v30, %v339_v31  ;;  %v326_v52 = vadd.f32 %v778_v37, %v299_v42  ;;  %v304_v53 = vpop.permute.xlu1 %303 }
  0xdf   :  { %v360_v63 = vmax.f32 %v344_v58, 0.0  ;;  %v345_v1 = vsub.f32 %v313_v57, %v329_v59  ;;  %v353_v33 = vsub.f32 %v321_v8, %v337_v11  ;;  %v368_v44 = vmax.f32 %v352_v22, 0.0 }
  0xe0   :  { %v793_v6 = vadd.f32 1.0, %v362_v60  ;;  %v363_v7 = vmax.f32 %v347_v61, 0.0  ;;  %v370_v56 = vmax.f32 %v354_v43, 0.0  ;;  %v824_v0 = vadd.s32 24, %v783_v49 }
  0xe1   :  { %v796_v9 = vadd.f32 1.0, %v360_v63  ;;  %v361_v10 = vmax.f32 %v345_v1, 0.0  ;;  %v603_v12 = vpop.f32.mrb[4].mxu0  ;;  %v611_v13 = vpop.f32.mrb[4].mxu1  ;;  %v369_v50 = vmax.f32 %v353_v33, 0.0  ;;  %v818_v57 = vadd.f32 1.0, %v368_v44 }
  0xe2   :  { %628 = vrcp.f32 %v793_v6  ;;  %v800_v15 = vadd.f32 1.0, %v363_v7  ;;  %v334_v16 = vmul.f32 2.0, %v603_v12  ;;  %v162_v17 = vpop.f32.mrb[5].mxu0  ;;  %v194_v18 = vpop.f32.mrb[5].mxu1  ;;  %v342_v54 = vmul.f32 2.0, %v611_v13 }
  0xe3   :  { %v604_v23 = vpop.f32.mrb[6].mxu0  ;;  %v612_v24 = vpop.f32.mrb[6].mxu1  ;;  %630 = vrcp.f32 %v796_v9  ;;  %v805_v25 = vadd.f32 1.0, %v361_v10  ;;  %v332_v27 = vmul.f32 2.0, %v162_v17  ;;  %v340_v47 = vmul.f32 2.0, %v194_v18 }
  0xe4   :  { %v350_v26 = vsub.f32 %v318_v14, %v334_v16  ;;  %v165_v28 = vpop.f32.mrb[7].mxu0  ;;  %v197_v29 = vpop.f32.mrb[7].mxu1  ;;  %v335_v35 = vmul.f32 2.0, %v604_v23  ;;  %632 = vrcp.f32 %v800_v15  ;;  %v343_v61 = vmul.f32 2.0, %v612_v24 }
  0xe5   :  { %v348_v39 = vsub.f32 %v316_v2, %v332_v27  ;;  %634 = vrcp.f32 %v805_v25  ;;  %v333_v55 = vmul.f32 2.0, %v165_v28  ;;  %v356_v60 = vsub.f32 %v324_v38, %v340_v47 }
  0xe6   :  { %v366_v36 = vmax.f32 %v350_v26, 0.0  ;;  %v351_v45 = vsub.f32 %v319_v19, %v335_v35  ;;  %v371_v1 = vmax.f32 %v355_v48, 0.0  ;;  %v327_v2 = vadd.f32 %v778_v37, %v304_v53 }
  0xe7   :  { %v364_v41 = vmax.f32 %v348_v39, 0.0  ;;  %v349_v63 = vsub.f32 %v317_v40, %v333_v55  ;;  %v827_v3 = vadd.f32 1.0, %v369_v50  ;;  %v358_v7 = vsub.f32 %v326_v52, %v342_v54 }
  0xe8   :  { %v814_v46 = vadd.f32 1.0, %v366_v36  ;;  %v367_v51 = vmax.f32 %v351_v45, 0.0  ;;  %v341_v10 = vmul.f32 2.0, %v197_v29  ;;  %v831_v12 = vadd.f32 1.0, %v370_v56 }
  0xe9   :  { %v380_v32 = vadd.f32 1.0, %v364_v41  ;;  %v365_v8 = vmax.f32 %v349_v63, 0.0  ;;  %v325_v16 = vadd.f32 %v778_v37, %v791_v5  ;;  %v372_v17 = vmax.f32 %v356_v60, 0.0 }
  0xea   :  { %636 = vrcp.f32 %v814_v46  ;;  %v821_v58 = vadd.f32 1.0, %v367_v51  ;;  %v359_v18 = vsub.f32 %v327_v2, %v343_v61  ;;  %v838_v22 = vadd.f32 1.0, %v371_v1 }
  0xeb   :  { %638 = vrcp.f32 %v380_v32  ;;  %v381_v19 = vadd.f32 1.0, %v365_v8  ;;  %v491_v23 = vadd.s32 8, %v783_v49  ;;  %v357_v24 = vsub.f32 %v325_v16, %v341_v10 }
  0xec   :  { %v629_v59 = vpop.eup %628  ;;  %640 = vrcp.f32 %v821_v58  ;;  %v494_v5 = vadd.s32 32, %v783_v49  ;;  %v375_v29 = vmax.f32 %v359_v18, 0.0  ;;  %vm511_vm3 = vcmp.eq.s32.totalorder %v824_v0, %v808_v34 }
  0xed   :  { %v631_v4 = vpop.eup %630  ;;  %v410_v11 = vmul.f32 %v629_v59, %v793_v6  ;;  %642 = vrcp.f32 %v818_v57  ;;  %vm509_vm4 = vcmp.eq.s32.totalorder %v491_v23, %v808_v34  ;;  %v373_v35 = vmax.f32 %v357_v24, 0.0 }
  0xee   :  { %v408_v13 = vmul.f32 %v631_v4, %v796_v9  ;;  %v633_v14 = vpop.eup %632  ;;  %644 = vrcp.f32 %v827_v3  ;;  %v374_v9 = vmax.f32 %v358_v7, 0.0  ;;  %vm512_vm5 = vcmp.eq.s32.totalorder %v494_v5, %v808_v34 }
  0xef   :  { %v411_v21 = vmul.f32 %v633_v14, %v800_v15  ;;  %v635_v6 = vpop.eup %634  ;;  %646 = vrcp.f32 %v381_v19  ;;  %v426_v26 = vsub.f32 2.0, %v410_v11  ;;  %v845_v15 = vadd.f32 1.0, %v372_v17 }
  0xf0   :  { %v424_v20 = vsub.f32 2.0, %v408_v13  ;;  %648 = vrcp.f32 %v831_v12  ;;  %v409_v37 = vmul.f32 %v635_v6, %v805_v25  ;;  %v855_v25 = vadd.f32 1.0, %v374_v9 }
  0xf1   :  { %v427_v28 = vsub.f32 2.0, %v411_v21  ;;  %650 = vrcp.f32 %v838_v22  ;;  %v442_v36 = vmul.f32 %v629_v59, %v426_v26  ;;  %v859_v45 = vadd.f32 1.0, %v375_v29 }
  0xf2   :  { %v440_v27 = vmul.f32 %v631_v4, %v424_v20  ;;  %v425_v31 = vsub.f32 2.0, %v409_v37  ;;  %652 = vrcp.f32 %v845_v15  ;;  %v495_v52 = vadd.s32 40, %v783_v49 }
  0xf3   :  { %v443_v44 = vmul.f32 %v633_v14, %v427_v28  ;;  %654 = vrcp.f32 %v855_v25  ;;  %v864_v53 = vadd.f32 1.0, %v373_v35  ;;  %v496_v8 = vadd.s32 48, %v783_v49 }
  0xf4   :  { %v637_v30 = vpop.eup %636  ;;  %v441_v39 = vmul.f32 %v635_v6, %v425_v31  ;;  %v524_v43 = vsel %vm508_vm2, %v440_v27, 0.0  ;;  %656 = vrcp.f32 %v859_v45  ;;  %v497_v10 = vadd.s32 56, %v783_v49 }
  0xf5   :  { %v639_v33 = vpop.eup %638  ;;  %v414_v48 = vmul.f32 %v637_v30, %v814_v46  ;;  %v527_v61 = vsel %vm511_vm3, %v443_v44, 0.0  ;;  %658 = vrcp.f32 %v864_v53  ;;  %vm513_vm6 = vcmp.eq.s32.totalorder %v495_v52, %v808_v34 }
  0xf6   :  { %v412_v40 = vmul.f32 %v639_v33, %v380_v32  ;;  %v641_v42 = vpop.eup %640  ;;  %v456_v47 = vadd.f32 %v441_v39, %v440_v27  ;;  %v525_v38 = vsel %vm509_vm4, %v441_v39, 0.0  ;;  %v526_v32 = vsel %vm510_vm1, %v442_v36, 0.0 }
  0xf7   :  { %v643_v41 = vpop.eup %642  ;;  %v540_v51 = vadd.f32 %v525_v38, %v524_v43  ;;  %v415_v59 = vmul.f32 %v641_v42, %v821_v58  ;;  %v430_v2 = vsub.f32 2.0, %v414_v48  ;;  %v499_v9 = vadd.s32 72, %v783_v49 }
  0xf8   :  { %v428_v50 = vsub.f32 2.0, %v412_v40  ;;  %v645_v54 = vpop.eup %644  ;;  %v457_v55 = vadd.f32 %v456_v47, %v442_v36  ;;  %v416_v46 = vmul.f32 %v643_v41, %v818_v57  ;;  %vm514_vm7 = vcmp.eq.s32.totalorder %v496_v8, %v808_v34 }
  0xf9   :  { %v647_v60 = vpop.eup %646  ;;  %v541_v63 = vadd.f32 %v540_v51, %v526_v32  ;;  %v417_v0 = vmul.f32 %v645_v54, %v827_v3  ;;  %v431_v13 = vsub.f32 2.0, %v415_v59  ;;  %v446_v20 = vmul.f32 %v637_v30, %v430_v2 }
  0xfa   :  { %v444_v56 = vmul.f32 %v639_v33, %v428_v50  ;;  %v649_v1 = vpop.eup %648  ;;  %v458_v4 = vadd.f32 %v457_v55, %v443_v44  ;;  %v413_v7 = vmul.f32 %v647_v60, %v381_v19  ;;  %v432_v17 = vsub.f32 2.0, %v416_v46 }
  0xfb   :  { %v542_v58 = vadd.f32 %v541_v63, %v527_v61  ;;  %v651_v57 = vpop.eup %650  ;;  %v418_v16 = vmul.f32 %v649_v1, %v831_v12  ;;  %v498_v19 = vadd.s32 64, %v783_v49  ;;  %v433_v3 = vsub.f32 2.0, %v417_v0 }
  0xfc   :  { %v528_v62 = vsel %vm512_vm5, %v444_v56, 0.0  ;;  %v459_v11 = vadd.f32 %v458_v4, %v444_v56  ;;  %v429_v14 = vsub.f32 2.0, %v413_v7  ;;  %v653_v6 = vpop.eup %652  ;;  %v419_v23 = vmul.f32 %v651_v57, %v838_v22 }
  0xfd   :  { %v543_v18 = vadd.f32 %v542_v58, %v528_v62  ;;  %v447_v24 = vmul.f32 %v641_v42, %v431_v13  ;;  %v655_v12 = vpop.eup %654  ;;  %v434_v5 = vsub.f32 2.0, %v418_v16  ;;  %v448_v27 = vmul.f32 %v643_v41, %v432_v17 }
  0xfe   :  { %v445_v21 = vmul.f32 %v647_v60, %v429_v14  ;;  %vm515_vm8 = vcmp.eq.s32.totalorder %v497_v10, %v808_v34  ;;  %vm516_vm9 = vcmp.eq.s32.totalorder %v498_v19, %v808_v34  ;;  %v530_v29 = vsel %vm514_vm7, %v446_v20, 0.0  ;;  %v657_v31 = vpop.eup %656 }
  0xff   :  { %v420_v30 = vmul.f32 %v653_v6, %v845_v15  ;;  %v500_v33 = vadd.s32 80, %v783_v49  ;;  %v435_v35 = vsub.f32 2.0, %v419_v23  ;;  %v501_v39 = vadd.s32 88, %v783_v49  ;;  %v659_v44 = vpop.eup %658 }
 0x100   :  { %v460_v26 = vadd.f32 %v459_v11, %v445_v21  ;;  %v529_v37 = vsel %vm513_vm6, %v445_v21, 0.0  ;;  %v449_v40 = vmul.f32 %v645_v54, %v433_v3  ;;  %v531_v42 = vsel %vm515_vm8, %v447_v24, 0.0 }
 0x101   :  { %v544_v28 = vadd.f32 %v543_v18, %v529_v37  ;;  %v450_v41 = vmul.f32 %v649_v1, %v434_v5  ;;  %v532_v47 = vsel %vm516_vm9, %v448_v27, 0.0  ;;  %vm517_vm10 = vcmp.eq.s32.totalorder %v499_v9, %v808_v34 }
 0x102   :  { %v461_v22 = vadd.f32 %v460_v26, %v446_v20  ;;  %v422_v48 = vmul.f32 %v655_v12, %v855_v25  ;;  %v436_v15 = vsub.f32 2.0, %v420_v30  ;;  %v421_v51 = vmul.f32 %v659_v44, %v864_v53 }
 0x103   :  { %v545_v36 = vadd.f32 %v544_v28, %v530_v29  ;;  %vm518_vm11 = vcmp.eq.s32.totalorder %v500_v33, %v808_v34  ;;  %v451_v52 = vmul.f32 %v651_v57, %v435_v35  ;;  %v502_v32 = vadd.s32 96, %v783_v49  ;;  %v481_v28 = vld [vmem:[%s921_s4] sm:$0x1] }
 0x104   :  { %v462_v43 = vadd.f32 %v461_v22, %v447_v24  ;;  %v533_v55 = vsel %vm517_vm10, %v449_v40, 0.0  ;;  %v423_v56 = vmul.f32 %v657_v31, %v859_v45  ;;  %v437_v59 = vsub.f32 2.0, %v421_v51 }
 0x105   :  { %v546_v38 = vadd.f32 %v545_v36, %v531_v42  ;;  %vm519_vm12 = vcmp.eq.s32.totalorder %v501_v39, %v808_v34  ;;  %v503_v46 = vadd.s32 104, %v783_v49  ;;  %v534_v61 = vsel %vm518_vm11, %v450_v41, 0.0 }
 0x106   :  { %v463_v50 = vadd.f32 %v462_v43, %v448_v27  ;;  %v438_v63 = vsub.f32 2.0, %v422_v48  ;;  %v452_v1 = vmul.f32 %v653_v6, %v436_v15  ;;  %v504_v2 = vadd.s32 112, %v783_v49 }
 0x107   :  { %v547_v54 = vadd.f32 %v546_v38, %v532_v47  ;;  %vm520_vm13 = vcmp.eq.s32.totalorder %v502_v32, %v808_v34  ;;  %v535_v62 = vsel %vm519_vm12, %v451_v52, 0.0  ;;  %v439_v7 = vsub.f32 2.0, %v423_v56 }
 0x108   :  { %v464_v60 = vadd.f32 %v463_v50, %v449_v40  ;;  %v453_v8 = vmul.f32 %v659_v44, %v437_v59  ;;  %v505_v58 = vadd.s32 120, %v783_v49  ;;  %vm521_vm14 = vcmp.eq.s32.totalorder %v503_v46, %v808_v34 }
 0x109   :  { %v548_v25 = vadd.f32 %v547_v54, %v533_v55  ;;  %v454_v57 = vmul.f32 %v655_v12, %v438_v63  ;;  %v536_v0 = vsel %vm520_vm13, %v452_v1, 0.0  ;;  %vm522_vm15 = vcmp.eq.s32.totalorder %v504_v2, %v808_v34 }
 0x10a   :  { %v465_v53 = vadd.f32 %v464_v60, %v450_v41  ;;  %v455_v14 = vmul.f32 %v657_v31, %v439_v7  ;;  %v537_v17 = vsel %vm521_vm14, %v453_v8, 0.0  ;;  %vm523_vm0 = vcmp.eq.s32.totalorder %v505_v58, %v808_v34 }
 0x10b   :  { %v549_v4 = vadd.f32 %v548_v25, %v534_v61  ;;  %v538_v19 = vsel %vm522_vm15, %v454_v57, 0.0 }
 0x10c   :  { %v466_v45 = vadd.f32 %v465_v53, %v451_v52  ;;  %v539_v6 = vsel %vm523_vm0, %v455_v14, 0.0 }
 0x10d   :  { %v550_v10 = vadd.f32 %v549_v4, %v535_v62 }
 0x10e   :  { %v467_v11 = vadd.f32 %v466_v45, %v452_v1 }
 0x10f   :  { %v551_v13 = vadd.f32 %v550_v10, %v536_v0 }
 0x110   :  { %v468_v16 = vadd.f32 %v467_v11, %v453_v8 }
 0x111   :  { %v552_v18 = vadd.f32 %v551_v13, %v537_v17 }
 0x112   :  { %v469_v20 = vadd.f32 %v468_v16, %v454_v57 }
 0x113   :  { %v553_v21 = vadd.f32 %v552_v18, %v538_v19 }
 0x114   :  { %v470_v49 = vadd.f32 %v469_v20, %v455_v14 }
 0x115   :  { %v554_v23 = vadd.f32 %v553_v21, %v539_v6 }
 0x116   :  { %v471_v9 = vrot.slane %v470_v49, 4 }
 0x117   :  { %v555_v3 = vrot.slane %v554_v23, 4 }
 0x118   :  { %v472_v24 = vadd.f32 %v471_v9, %v470_v49 }
 0x119   :  { %v556_v37 = vadd.f32 %v555_v3, %v554_v23 }
 0x11a   :  { %v473_v26 = vrot.slane %v472_v24, 2 }
 0x11b   :  { %v557_v27 = vrot.slane %v556_v37, 2 }
 0x11c   :  { %v474_v12 = vadd.f32 %v473_v26, %v472_v24 }
 0x11d   :  { %v558_v30 = vadd.f32 %v557_v27, %v556_v37 }
 0x11e   :  { %v475_v5 = vrot.slane %v474_v12, 1 }
 0x11f   :  { %v559_v22 = vrot.slane %v558_v30, 1 }
 0x120   :  { %v476_v34 = vadd.f32 %v475_v5, %v474_v12 }
 0x121   :  { %v560_v31 = vadd.f32 %v559_v22, %v558_v30 }
 0x122   :  { %v484_v29 = vadd.f32 %v481_v28, %v476_v34 }
 0x124   :  { %485 = vst [vmem:[%s921_s4] sm:$0x1] %v484_v29 }
 0x12b   :  { %v561_v33 = vld [vmem:[%s921_s4] sm:$0x1] }
 0x12c   :  { %v562_v35 = vsub.f32 %v561_v33, %v560_v31 }
 0x12e   :  { %563 = vst [vmem:[%s921_s4] sm:$0x1] %v562_v35 }

</bundles_post_ra>
